<compile_context>
chip_gen: v5e
topology: v5e:2x2
jax: 0.10.0
libtpu: 0.0.40
codegen_flags: <defaults>
</compile_context>

<pallas_src>
import functools

import jax
import jax.numpy as jnp
from jax.experimental import pallas as pl
from jax.experimental.pallas import tpu as pltpu


def _gaussian_smearing_kernel(coeff, dist_ref, offset_ref, out_ref):
    # dist_ref:   (TILE_N, 1)   current tile of distances
    # offset_ref: (1, G)        full set of Gaussian centers (resident in VMEM)
    # out_ref:    (TILE_N, G)
    d = dist_ref[...] - offset_ref[...]          # (TILE_N, 1) - (1, G) -> (TILE_N, G)
    out_ref[...] = jnp.exp(coeff * d * d).astype(out_ref.dtype)


def gaussian_smearing(dist, *, start=-5.0, stop=5.0, num_gaussians=50,
                      basis_width_scalar=1.0, tile_n=2048,
                      out_dtype=jnp.float32):
    """JAX/Pallas equivalent of GaussianSmearing.forward.

    dist: any-shaped float array; flattened like dist.view(-1, 1).
    Returns (N, num_gaussians) array of `out_dtype`.
    """
    # Pure-Python step/coeff (numerically equal to linspace's step, jit-safe).
    step = (float(stop) - float(start)) / (num_gaussians - 1)
    coeff = -0.5 / (float(basis_width_scalar) * step) ** 2

    offset = jnp.linspace(start, stop, num_gaussians, dtype=jnp.float32)

    dist_flat = jnp.reshape(dist, (-1,)).astype(jnp.float32)
    n = dist_flat.shape[0]

    # Row tile: multiple of 8 (sublane), clamped to the (8-aligned) problem size
    # so tiny inputs don't get padded out to thousands of rows.
    n_rounded8 = max(8, pl.cdiv(n, 8) * 8)
    tile = min(max(8, (tile_n // 8) * 8), n_rounded8)

    n_pad = pl.cdiv(n, tile) * tile
    if n_pad != n:
        dist_flat = jnp.pad(dist_flat, (0, n_pad - n))

    dist_col = dist_flat.reshape(n_pad, 1)
    offset_row = offset.reshape(1, num_gaussians)
    grid = (n_pad // tile,)

    out = pl.pallas_call(
        functools.partial(_gaussian_smearing_kernel, coeff),
        out_shape=jax.ShapeDtypeStruct((n_pad, num_gaussians), out_dtype),
        grid_spec=pl.GridSpec(
            grid=grid,
            in_specs=[
                pl.BlockSpec((tile, 1), lambda i: (i, 0)),
                pl.BlockSpec((1, num_gaussians), lambda i: (0, 0)),
            ],
            out_specs=pl.BlockSpec((tile, num_gaussians), lambda i: (i, 0)),
        ),
        compiler_params=pltpu.CompilerParams(
            dimension_semantics=("parallel",)),
    )(dist_col, offset_row)

    if n_pad != n:
        out = out[:n]
    return out


def _reference(dist, *, start=-5.0, stop=5.0, num_gaussians=50, basis_width_scalar=1.0):
    step = (float(stop) - float(start)) / (num_gaussians - 1)
    coeff = -0.5 / (float(basis_width_scalar) * step) ** 2
    offset = jnp.linspace(start, stop, num_gaussians, dtype=jnp.float32)
    d = jnp.reshape(dist, (-1, 1)).astype(jnp.float32) - offset.reshape(1, -1)
    return jnp.exp(coeff * d * d)


if __name__ == "__main__":
    key = jax.random.PRNGKey(0)

    # Small, deterministic set of "edge distances" (e.g. 2 molecules * 30 edges).
    n_edges = 60
    dist = jax.random.uniform(key, (n_edges,), minval=0.0, maxval=5.0,
                              dtype=jnp.float32)

    out = gaussian_smearing(dist)
    out = jax.block_until_ready(out)
    ref = _reference(dist)
    assert out.shape == (n_edges, 50), out.shape
    assert jnp.allclose(out, ref, atol=1e-5, rtol=1e-5), \
        float(jnp.max(jnp.abs(out - ref)))

    # Second small case that exercises a multi-step grid (grid length 3).
    n_edges2 = 300
    dist2 = jax.random.uniform(jax.random.PRNGKey(1), (n_edges2,),
                               minval=0.0, maxval=5.0, dtype=jnp.float32)
    out2 = jax.block_until_ready(gaussian_smearing(dist2, tile_n=128))
    ref2 = _reference(dist2)
    assert out2.shape == (n_edges2, 50), out2.shape
    assert jnp.allclose(out2, ref2, atol=1e-5, rtol=1e-5), \
        float(jnp.max(jnp.abs(out2 - ref2)))

    print("KERNEL_OK")
</pallas_src>

<mosaic_0001>
module attributes {stable_mosaic.version = 11 : i64} {
  func.func @_gaussian_smearing_kernel(%arg0: i32, %arg1: memref<64x1xf32, #tpu.memory_space<vmem>>, %arg2: memref<1x50xf32, #tpu.memory_space<vmem>>, %arg3: memref<64x50xf32, #tpu.memory_space<vmem>>) attributes {dimension_semantics = [#tpu.dimension_semantics<parallel>], iteration_bounds = array<i64: 1>, scalar_prefetch = 0 : i64, scratch_operands = 0 : i64, tpu.core_type = #tpu.core_type<tc>, window_params = [{transform_indices = @transform_0, window_bounds = array<i64: 64, 1>}, {pipeline_mode = #tpu.pipeline_mode<synchronous>, transform_indices = @transform_1, window_bounds = array<i64: 1, 50>}, {transform_indices = @transform_2, window_bounds = array<i64: 64, 50>}]} {
    %c0 = arith.constant 0 : index
    %c0_0 = arith.constant 0 : index
    %0 = vector.load %arg1[%c0, %c0_0] : memref<64x1xf32, #tpu.memory_space<vmem>>, vector<64x1xf32>
    %c0_1 = arith.constant 0 : index
    %c0_2 = arith.constant 0 : index
    %1 = vector.load %arg2[%c0_1, %c0_2] : memref<1x50xf32, #tpu.memory_space<vmem>>, vector<1x50xf32>
    %2 = vector.broadcast %0 : vector<64x1xf32> to vector<64x50xf32>
    %3 = vector.broadcast %1 : vector<1x50xf32> to vector<64x50xf32>
    %4 = arith.subf %2, %3 : vector<64x50xf32>
    %cst = arith.constant -1.200500e+01 : f32
    %5 = vector.broadcast %cst : f32 to vector<64x50xf32>
    %6 = arith.mulf %5, %4 : vector<64x50xf32>
    %7 = arith.mulf %6, %4 : vector<64x50xf32>
    %8 = math.exp %7 : vector<64x50xf32>
    %c0_3 = arith.constant 0 : index
    %c0_4 = arith.constant 0 : index
    %9 = vector.load %arg3[%c0_3, %c0_4] : memref<64x50xf32, #tpu.memory_space<vmem>>, vector<64x50xf32>
    tpu.vector_store %arg3[%c0_3, %c0_4], %8 {strides = array<i32>} : memref<64x50xf32, #tpu.memory_space<vmem>>, vector<64x50xf32>,
    return
  }
  func.func @transform_0(%arg0: i32) -> (i32, i32) {
    %c0_i32 = arith.constant 0 : i32
    %c0_i32_0 = arith.constant 0 : i32
    return %arg0, %c0_i32 : i32, i32
  }
  func.func @transform_1(%arg0: i32) -> (i32, i32) {
    %c0_i32 = arith.constant 0 : i32
    %c0_i32_0 = arith.constant 0 : i32
    %c0_i32_1 = arith.constant 0 : i32
    return %c0_i32, %c0_i32_0 : i32, i32
  }
  func.func @transform_2(%arg0: i32) -> (i32, i32) {
    %c0_i32 = arith.constant 0 : i32
    %c0_i32_0 = arith.constant 0 : i32
    return %arg0, %c0_i32 : i32, i32
  }
}

</mosaic_0001>

<bundles_post_ra>
// kernel: tpu_custom_call.1
= control target key start
LH: loop header
LB: loop body
LE: loop exit
PB: predicated region body
PF: predicated region fallthrough
CT: control target
= control target key end

     0   :  { %v137_v0 = vmov 0   ;;  %vm103_vm0 = vcmask 408576   ;;  %s212_s0 = inlined_call_operand.vmem [shape: f32[64,1], index: 0, kind: input, shape index: {}]   ;;  %s213_s1 = inlined_call_operand.vmem [shape: f32[1,50], index: 1, kind: input, shape index: {}]   ;;  %s214_s2 = inlined_call_operand.vmem [shape: f32[64,50], index: 2, kind: output, shape index: {}]  }
   0x1   :  { %118 = vset.pattern.permute.xlu1 %v137_v0  ;;  %117 = vset.pattern.permute.xlu0 %v137_v0  ;;  %v13_v1 = vld [vmem:[%s212_s0 + $0x10] sm:$0xff]  ;;  %v11_v2 = vld [vmem:[%s212_s0] sm:$0xff]  ;;  %v14_v4 = vld [vmem:[%s212_s0 + $0x18] sm:$0xff] }
   0x2   :  { %32 = vperm.xlu1 %118, %v13_v1   ;;  %22 = vperm.xlu0 %117, %v11_v2   ;;  %v15_v3 = vld [vmem:[%s212_s0 + $0x20] sm:$0xff]  ;;  %v12_v5 = vld [vmem:[%s212_s0 + $0x8] sm:$0xff]  ;;  %v18_v7 = vld [vmem:[%s212_s0 + $0x38] sm:$0xff] }
   0x3   :  { %119 = vset.pattern.permute.xlu2 %v137_v0  ;;  %v16_v6 = vld [vmem:[%s212_s0 + $0x28] sm:$0xff]  ;;  %v17_v8 = vld [vmem:[%s212_s0 + $0x30] sm:$0xff]  ;;  %v120_v9 = vld [vmem:[%s213_s1] ss:$0 sm:$0xff] }
   0x4   :  { %42 = vperm.xlu2 %119, %v15_v3  }
   0xa   :  { %37 = vperm.xlu1 %118, %v14_v4   ;;  %27 = vperm.xlu0 %117, %v12_v5  }
   0xc   :  { %47 = vperm.xlu2 %119, %v16_v6  }
  0x12   :  { %57 = vperm.xlu1 %118, %v18_v7   ;;  %52 = vperm.xlu0 %117, %v17_v8  }
  0x5e   :  { %v43_v10 = vpop.permute.xlu2 %42 }
  0x5f   :  { %v67_v11 = vsub.f32 %v43_v10, %v120_v9 }
  0x61   :  { %v75_v12 = vmul.f32 -12.005, %v67_v11 }
  0x63   :  { %v83_v13 = vmul.f32 %v75_v12, %v67_v11 }
  0x65   :  { %v95_v14 = vmul.f32 1.442695, %v83_v13 }
  0x66   :  { %v48_v15 = vpop.permute.xlu2 %47 }
  0x67   :  { %121 = vpow2.f32 %v95_v14  ;;  %v68_v16 = vsub.f32 %v48_v15, %v120_v9 }
  0x69   :  { %v76_v17 = vmul.f32 -12.005, %v68_v16 }
  0x6b   :  { %v84_v18 = vmul.f32 %v76_v17, %v68_v16 }
  0x6d   :  { %v122_v19 = vpop.eup %121  ;;  %v97_v20 = vmul.f32 1.442695, %v84_v18 }
  0x6e   :  { %108 = vst.msk [vmem:[%s214_s2 + $0x20] sm:$0xff] %vm103_vm0, %v122_v19 }
  0x6f   :  { %123 = vpow2.f32 %v97_v20 }
  0x74   :  { %v33_v21 = vpop.permute.xlu1 %32  ;;  %v23_v22 = vpop.permute.xlu0 %22 }
  0x75   :  { %v124_v23 = vpop.eup %123  ;;  %v65_v24 = vsub.f32 %v33_v21, %v120_v9  ;;  %v63_v25 = vsub.f32 %v23_v22, %v120_v9 }
  0x76   :  { %109 = vst.msk [vmem:[%s214_s2 + $0x28] sm:$0xff] %vm103_vm0, %v124_v23 }
  0x77   :  { %v73_v26 = vmul.f32 -12.005, %v65_v24  ;;  %v71_v27 = vmul.f32 -12.005, %v63_v25 }
  0x79   :  { %v81_v28 = vmul.f32 %v73_v26, %v65_v24  ;;  %v79_v29 = vmul.f32 %v71_v27, %v63_v25 }
  0x7b   :  { %v91_v30 = vmul.f32 1.442695, %v81_v28  ;;  %v87_v31 = vmul.f32 1.442695, %v79_v29 }
  0x7c   :  { %v38_v32 = vpop.permute.xlu1 %37  ;;  %v28_v33 = vpop.permute.xlu0 %27 }
  0x7d   :  { %125 = vpow2.f32 %v91_v30  ;;  %v66_v34 = vsub.f32 %v38_v32, %v120_v9  ;;  %v64_v35 = vsub.f32 %v28_v33, %v120_v9 }
  0x7e   :  { %127 = vpow2.f32 %v87_v31 }
  0x7f   :  { %v74_v36 = vmul.f32 -12.005, %v66_v34  ;;  %v72_v37 = vmul.f32 -12.005, %v64_v35 }
  0x81   :  { %v82_v38 = vmul.f32 %v74_v36, %v66_v34  ;;  %v80_v39 = vmul.f32 %v72_v37, %v64_v35 }
  0x83   :  { %v126_v40 = vpop.eup %125  ;;  %v93_v41 = vmul.f32 1.442695, %v82_v38  ;;  %v89_v42 = vmul.f32 1.442695, %v80_v39 }
  0x84   :  { %v128_v43 = vpop.eup %127  ;;  %106 = vst.msk [vmem:[%s214_s2 + $0x10] sm:$0xff] %vm103_vm0, %v126_v40  ;;  %v58_v44 = vpop.permute.xlu1 %57 }
  0x85   :  { %v53_v45 = vpop.permute.xlu0 %52  ;;  %104 = vst.msk [vmem:[%s214_s2] sm:$0xff] %vm103_vm0, %v128_v43  ;;  %129 = vpow2.f32 %v93_v41  ;;  %v70_v46 = vsub.f32 %v58_v44, %v120_v9 }
  0x86   :  { %v69_v47 = vsub.f32 %v53_v45, %v120_v9  ;;  %131 = vpow2.f32 %v89_v42 }
  0x87   :  { %v78_v48 = vmul.f32 -12.005, %v70_v46 }
  0x88   :  { %v77_v49 = vmul.f32 -12.005, %v69_v47 }
  0x89   :  { %v86_v50 = vmul.f32 %v78_v48, %v70_v46 }
  0x8a   :  { %v85_v51 = vmul.f32 %v77_v49, %v69_v47 }
  0x8b   :  { %v130_v52 = vpop.eup %129  ;;  %v101_v53 = vmul.f32 1.442695, %v86_v50 }
  0x8c   :  { %v99_v54 = vmul.f32 1.442695, %v85_v51  ;;  %v132_v55 = vpop.eup %131  ;;  %107 = vst.msk [vmem:[%s214_s2 + $0x18] sm:$0xff] %vm103_vm0, %v130_v52 }
  0x8d   :  { %105 = vst.msk [vmem:[%s214_s2 + $0x8] sm:$0xff] %vm103_vm0, %v132_v55  ;;  %133 = vpow2.f32 %v101_v53 }
  0x8e   :  { %135 = vpow2.f32 %v99_v54 }
  0x93   :  { %v134_v56 = vpop.eup %133 }
  0x94   :  { %v136_v57 = vpop.eup %135  ;;  %111 = vst.msk [vmem:[%s214_s2 + $0x38] sm:$0xff] %vm103_vm0, %v134_v56 }
  0x95   :  { %110 = vst.msk [vmem:[%s214_s2 + $0x30] sm:$0xff] %vm103_vm0, %v136_v57 }

</bundles_post_ra>
